<compile_context>
chip_gen: v6e
topology: v6e:2x2x1
jax: 0.10.0
libtpu: 0.0.40
codegen_flags: <defaults>
</compile_context>

<pallas_src>
import functools

import numpy as np
import jax
import jax.numpy as jnp
from jax.experimental import pallas as pl
from jax.experimental.pallas import tpu as pltpu

NUM_CLASSES = 19


# ----------------------------------------------------------------------------
# Chip-safe VMEM limit (v7x has 64 MiB per TC; v5e/v6e have 128 MiB)
# ----------------------------------------------------------------------------
def _query_vmem_limit():
    cap = 64 * 1024 * 1024
    try:
        info = pltpu.get_tpu_info()
        cap = int(getattr(info, "vmem_capacity_bytes", 0)) or cap
    except Exception:
        pass
    return max(32 * 1024 * 1024, min(int(cap * 3 // 4), 100 * 1024 * 1024))


_VMEM_LIMIT = _query_vmem_limit()


def _cp(semantics):
    return pltpu.CompilerParams(dimension_semantics=semantics,
                                vmem_limit_bytes=_VMEM_LIMIT)


def _round_up(v, m):
    return ((v + m - 1) // m) * m


# ----------------------------------------------------------------------------
# Activations (applied inside kernels, in f32)
# ----------------------------------------------------------------------------
def _act(y, act):
    if act == "relu":
        return jnp.maximum(y, 0.0)
    if act == "hardswish":
        return y * jnp.clip(y + 3.0, 0.0, 6.0) * (1.0 / 6.0)
    if act == "hardsigmoid":
        return jnp.clip(y + 3.0, 0.0, 6.0) * (1.0 / 6.0)
    if act == "sigmoid":
        return jax.nn.sigmoid(y)
    return y


# ----------------------------------------------------------------------------
# Fused matmul + BN + activation (+ optional residual) kernel
# ----------------------------------------------------------------------------
def _mm_kernel(x_ref, w_ref, s_ref, b_ref, o_ref, *, act):
    y = jnp.dot(x_ref[...], w_ref[...], preferred_element_type=jnp.float32)
    y = y * s_ref[...] + b_ref[...]
    o_ref[...] = _act(y, act).astype(o_ref.dtype)


def _mm_res_kernel(x_ref, w_ref, s_ref, b_ref, r_ref, o_ref, *, act):
    y = jnp.dot(x_ref[...], w_ref[...], preferred_element_type=jnp.float32)
    y = _act(y * s_ref[...] + b_ref[...], act)
    y = y + r_ref[...].astype(jnp.float32)
    o_ref[...] = y.astype(o_ref.dtype)


def matmul_bias_act(x, w, s, b, act="none", out_dtype=jnp.bfloat16,
                    residual=None, tile_m=512):
    """act(scale*(x@w)+bias) [+ residual].  x:(M,K) w:(K,N) s,b:(N,)."""
    M, K = x.shape
    Nc = w.shape[-1]
    w2 = w.astype(jnp.bfloat16)
    s2 = s.reshape(1, Nc).astype(jnp.float32)
    b2 = b.reshape(1, Nc).astype(jnp.float32)
    Np = Nc
    if residual is None and Nc < 128:           # lane-dense output store
        Np = 128
        w2 = jnp.pad(w2, ((0, 0), (0, Np - Nc)))
        s2 = jnp.pad(s2, ((0, 0), (0, Np - Nc)))
        b2 = jnp.pad(b2, ((0, 0), (0, Np - Nc)))

    xb = x.astype(jnp.bfloat16)
    Mp8 = _round_up(max(M, 1), 8)
    tm = Mp8 if Mp8 <= tile_m else tile_m
    Mp = _round_up(M, tm)
    if Mp != M:
        xb = jnp.pad(xb, ((0, Mp - M), (0, 0)))
    grid = (Mp // tm,)

    if residual is None:
        out = pl.pallas_call(
            functools.partial(_mm_kernel, act=act),
            out_shape=jax.ShapeDtypeStruct((Mp, Np), out_dtype),
            grid=grid,
            in_specs=[pl.BlockSpec((tm, K), lambda i: (i, 0)),
                      pl.BlockSpec((K, Np), lambda i: (0, 0)),
                      pl.BlockSpec((1, Np), lambda i: (0, 0)),
                      pl.BlockSpec((1, Np), lambda i: (0, 0))],
            out_specs=pl.BlockSpec((tm, Np), lambda i: (i, 0)),
            compiler_params=_cp(("parallel",)),
        )(xb, w2, s2, b2)
    else:
        r = residual.astype(jnp.bfloat16)
        if Mp != M:
            r = jnp.pad(r, ((0, Mp - M), (0, 0)))
        out = pl.pallas_call(
            functools.partial(_mm_res_kernel, act=act),
            out_shape=jax.ShapeDtypeStruct((Mp, Np), out_dtype),
            grid=grid,
            in_specs=[pl.BlockSpec((tm, K), lambda i: (i, 0)),
                      pl.BlockSpec((K, Np), lambda i: (0, 0)),
                      pl.BlockSpec((1, Np), lambda i: (0, 0)),
                      pl.BlockSpec((1, Np), lambda i: (0, 0)),
                      pl.BlockSpec((tm, Np), lambda i: (i, 0))],
            out_specs=pl.BlockSpec((tm, Np), lambda i: (i, 0)),
            compiler_params=_cp(("parallel",)),
        )(xb, w2, s2, b2, r)

    out = out[:M]
    if Np != Nc:
        out = out[:, :Nc]
    return out


# ----------------------------------------------------------------------------
# KxK stride-1 conv via tap accumulation (no im2col materialization)
# ----------------------------------------------------------------------------
def _conv_taps_kernel(*args, k, dil, wo, act):
    xs = args[:k]
    w_ref, s_ref, b_ref, o_ref = args[k:k + 4]
    acc = None
    for i in range(k):
        row = xs[i][0, 0]                                 # (Wp, Cin) bf16
        for j in range(k):
            t = i * k + j
            win = row[j * dil:j * dil + wo, :]            # (Wo, Cin)
            c = jnp.dot(win, w_ref[t], preferred_element_type=jnp.float32)
            acc = c if acc is None else acc + c
    y = acc * s_ref[...] + b_ref[...]
    o_ref[0, 0] = _act(y, act).astype(o_ref.dtype)


def _conv_taps(x, p, k, padding, dilation, act, out_dtype):
    N, H, W, C = x.shape
    kk = k * k
    Ho = H + 2 * padding - dilation * (k - 1)
    Wo = W + 2 * padding - dilation * (k - 1)
    Wp = Wo + (k - 1) * dilation                          # == W + 2*padding
    xp = jnp.pad(x.astype(jnp.bfloat16),
                 ((0, 0), (padding, padding), (padding, padding), (0, 0)))

    cout = p["w"].shape[-1]
    coutp = cout if cout >= 128 else 128                  # lane-dense output
    w = p["w"].reshape(kk, C, cout).astype(jnp.bfloat16)
    s = p["s"].reshape(1, cout).astype(jnp.float32)
    b = p["b"].reshape(1, cout).astype(jnp.float32)
    if coutp != cout:
        w = jnp.pad(w, ((0, 0), (0, 0), (0, coutp - cout)))
        s = jnp.pad(s, ((0, 0), (0, coutp - cout)))
        b = jnp.pad(b, ((0, 0), (0, coutp - cout)))

    x_specs = [pl.BlockSpec((1, 1, Wp, C),
                            (lambda n, h, i=i, d=dilation: (n, h + i * d, 0, 0)))
               for i in range(k)]
    out = pl.pallas_call(
        functools.partial(_conv_taps_kernel, k=k, dil=dilation, wo=Wo, act=act),
        out_shape=jax.ShapeDtypeStruct((N, Ho, Wo, coutp), out_dtype),
        grid=(N, Ho),
        in_specs=x_specs + [pl.BlockSpec((kk, C, coutp), lambda n, h: (0, 0, 0)),
                            pl.BlockSpec((1, coutp), lambda n, h: (0, 0)),
                            pl.BlockSpec((1, coutp), lambda n, h: (0, 0))],
        out_specs=pl.BlockSpec((1, 1, Wo, coutp), lambda n, h: (n, h, 0, 0)),
        compiler_params=_cp(("parallel", "parallel")),
    )(*([xp] * k), w, s, b)
    if coutp != cout:
        out = out[..., :cout]
    return out


# ----------------------------------------------------------------------------
# Depthwise conv
# ----------------------------------------------------------------------------
def _dw_taps_kernel(*args, k, dil, wo, act):
    xs = args[:k]
    w_ref, s_ref, b_ref, o_ref = args[k:k + 4]
    acc = None
    for i in range(k):
        row = xs[i][0, 0].astype(jnp.float32)             # (Wp, C)
        for j in range(k):
            t = i * k + j
            contrib = row[j * dil:j * dil + wo, :] * w_ref[pl.ds(t, 1), :]
            acc = contrib if acc is None else acc + contrib
    y = acc * s_ref[...] + b_ref[...]
    o_ref[0, 0] = _act(y, act).astype(o_ref.dtype)


def _dw_taps(x, p, k, padding, dilation, act):
    N, H, W, C = x.shape
    kk = k * k
    Ho = H + 2 * padding - dilation * (k - 1)
    Wo = W + 2 * padding - dilation * (k - 1)
    Wp = Wo + (k - 1) * dilation
    xp = jnp.pad(x.astype(jnp.bfloat16),
                 ((0, 0), (padding, padding), (padding, padding), (0, 0)))
    w = p["w"].astype(jnp.float32)                        # (kk, C)
    s = p["s"].reshape(1, C).astype(jnp.float32)
    b = p["b"].reshape(1, C).astype(jnp.float32)

    x_specs = [pl.BlockSpec((1, 1, Wp, C),
                            (lambda n, h, i=i, d=dilation: (n, h + i * d, 0, 0)))
               for i in range(k)]
    return pl.pallas_call(
        functools.partial(_dw_taps_kernel, k=k, dil=dilation, wo=Wo, act=act),
        out_shape=jax.ShapeDtypeStruct((N, Ho, Wo, C), jnp.bfloat16),
        grid=(N, Ho),
        in_specs=x_specs + [pl.BlockSpec((kk, C), lambda n, h: (0, 0)),
                            pl.BlockSpec((1, C), lambda n, h: (0, 0)),
                            pl.BlockSpec((1, C), lambda n, h: (0, 0))],
        out_specs=pl.BlockSpec((1, 1, Wo, C), lambda n, h: (n, h, 0, 0)),
        compiler_params=_cp(("parallel", "parallel")),
    )(*([xp] * k), w, s, b)


def _dw_stacked_kernel(p_ref, w_ref, s_ref, b_ref, o_ref, *, kk, act):
    acc = p_ref[0].astype(jnp.float32) * w_ref[0]
    for t in range(1, kk):
        acc = acc + p_ref[t].astype(jnp.float32) * w_ref[t]
    y = acc * s_ref[...] + b_ref[...]
    o_ref[...] = _act(y, act).astype(o_ref.dtype)


def _im2col(x, k, stride, padding, dilation, stack=False):
    N, H, W, C = x.shape
    xp = jnp.pad(x, ((0, 0), (padding, padding), (padding, padding), (0, 0)))
    Ho = (H + 2 * padding - dilation * (k - 1) - 1) // stride + 1
    Wo = (W + 2 * padding - dilation * (k - 1) - 1) // stride + 1
    cols = []
    for i in range(k):
        for j in range(k):
            sl = xp[:, i * dilation: i * dilation + (Ho - 1) * stride + 1: stride,
                       j * dilation: j * dilation + (Wo - 1) * stride + 1: stride, :]
            cols.append(sl)
    if stack:
        return jnp.stack(cols, axis=0), Ho, Wo
    return jnp.concatenate(cols, axis=-1), Ho, Wo


def _dw_strided(x, p, k, stride, padding, dilation, act):
    # TODO(synk): stride-2 depthwise still stacks taps (3 small layers), but tiled.
    N, _, _, C = x.shape
    patches, Ho, Wo = _im2col(x.astype(jnp.bfloat16), k, stride, padding, dilation,
                              stack=True)
    KK = patches.shape[0]
    M = N * Ho * Wo
    patches = patches.reshape(KK, M, C)
    Mp8 = _round_up(M, 8)
    tm = Mp8 if Mp8 <= 256 else 256
    Mp = _round_up(M, tm)
    if Mp != M:
        patches = jnp.pad(patches, ((0, 0), (0, Mp - M), (0, 0)))
    w = p["w"].reshape(KK, 1, C).astype(jnp.float32)
    out = pl.pallas_call(
        functools.partial(_dw_stacked_kernel, kk=KK, act=act),
        out_shape=jax.ShapeDtypeStruct((Mp, C), jnp.bfloat16),
        grid=(Mp // tm,),
        in_specs=[pl.BlockSpec((KK, tm, C), lambda i: (0, i, 0)),
                  pl.BlockSpec((KK, 1, C), lambda i: (0, 0, 0)),
                  pl.BlockSpec((1, C), lambda i: (0, 0)),
                  pl.BlockSpec((1, C), lambda i: (0, 0))],
        out_specs=pl.BlockSpec((tm, C), lambda i: (i, 0)),
        compiler_params=_cp(("parallel",)),
    )(patches, w, p["s"].reshape(1, C).astype(jnp.float32),
      p["b"].reshape(1, C).astype(jnp.float32))
    return out[:M].reshape(N, Ho, Wo, C)


def depthwise_conv(x, p, k, stride, padding, dilation=1, act="none"):
    if stride == 1:
        return _dw_taps(x, p, k, padding, dilation, act)
    return _dw_strided(x, p, k, stride, padding, dilation, act)


# ----------------------------------------------------------------------------
# Conv2d dispatcher (+ folded BN + activation)
# ----------------------------------------------------------------------------
def conv2d(x, p, k, stride=1, padding=0, dilation=1, act="none",
           out_dtype=jnp.bfloat16):
    if k == 1:
        xs = x if stride == 1 else x[:, ::stride, ::stride, :]
        N, H, W, C = xs.shape
        y = matmul_bias_act(xs.reshape(N * H * W, C), p["w"], p["s"], p["b"],
                            act, out_dtype=out_dtype)
        return y.reshape(N, H, W, -1)
    if stride == 1:
        return _conv_taps(x, p, k, padding, dilation, act, out_dtype)
    # stride > 1 KxK conv: only the stem (Cin=3), small -> im2col + matmul.
    cols, Ho, Wo = _im2col(x, k, stride, padding, dilation)
    N = x.shape[0]
    y = matmul_bias_act(cols.reshape(N * Ho * Wo, -1), p["w"], p["s"], p["b"],
                        act, out_dtype=out_dtype)
    return y.reshape(N, Ho, Wo, -1)


# ----------------------------------------------------------------------------
# Global average pool (lane-dense, tiled reduction) and SE gating
# ----------------------------------------------------------------------------
def _pick_hw_tile(hw, cap=2048):
    if hw % 8 != 0:
        return hw
    t = min(hw, cap)
    while hw % t != 0:
        t -= 8
    return t


def _gap_kernel(x_ref, o_ref, *, inv_hw):
    t = pl.program_id(1)

    @pl.when(t == 0)
    def _():
        o_ref[...] = jnp.zeros_like(o_ref)

    o_ref[...] += jnp.sum(x_ref[...].astype(jnp.float32), axis=1,
                          keepdims=True) * inv_hw


def global_avg_pool(x):
    N, H, W, C = x.shape
    HW = H * W
    x3 = x.reshape(N, HW, C)
    t_hw = _pick_hw_tile(HW)
    num_t = HW // t_hw
    out = pl.pallas_call(
        functools.partial(_gap_kernel, inv_hw=1.0 / HW),
        out_shape=jax.ShapeDtypeStruct((N, 1, C), jnp.float32),
        grid=(N, num_t),
        in_specs=[pl.BlockSpec((1, t_hw, C), lambda n, t: (n, t, 0))],
        out_specs=pl.BlockSpec((1, 1, C), lambda n, t: (n, 0, 0)),
        compiler_params=_cp(("parallel", "arbitrary")),
    )(x3)
    return out.reshape(N, C)


def _se_kernel(x_ref, g_ref, o_ref, *, add_one, relu):
    g = g_ref[...]
    if add_one:
        g = g + 1.0
    y = x_ref[...].astype(jnp.float32) * g
    if relu:
        y = jnp.maximum(y, 0.0)
    o_ref[...] = y.astype(o_ref.dtype)


def se_apply(x, gate, add_residual=False, relu=False):
    """x * gate (SE).  add_residual=True computes relu?(x + x*gate) = x*(1+gate)."""
    N, H, W, C = x.shape
    HW = H * W
    x3 = x.reshape(N, HW, C)
    g3 = gate.reshape(N, 1, C).astype(jnp.float32)
    t_hw = _pick_hw_tile(HW)
    num_t = HW // t_hw
    out = pl.pallas_call(
        functools.partial(_se_kernel, add_one=add_residual, relu=relu),
        out_shape=jax.ShapeDtypeStruct((N, HW, C), x.dtype),
        grid=(N, num_t),
        in_specs=[pl.BlockSpec((1, t_hw, C), lambda n, t: (n, t, 0)),
                  pl.BlockSpec((1, 1, C), lambda n, t: (n, 0, 0))],
        out_specs=pl.BlockSpec((1, t_hw, C), lambda n, t: (n, t, 0)),
        compiler_params=_cp(("parallel", "parallel")),
    )(x3, g3)
    return out.reshape(N, H, W, C)


def squeeze_excite(x, fc1, fc2, gate_act, add_residual=False, relu=False):
    pooled = global_avg_pool(x)                                  # (N, C) f32
    h = matmul_bias_act(pooled, fc1["w"], fc1["s"], fc1["b"], "relu",
                        out_dtype=jnp.float32)
    g = matmul_bias_act(h, fc2["w"], fc2["s"], fc2["b"], gate_act,
                        out_dtype=jnp.float32)
    return se_apply(x, g, add_residual=add_residual, relu=relu)


# ----------------------------------------------------------------------------
# Bilinear resize (align_corners=False) as two separable per-image matmuls
# ----------------------------------------------------------------------------
def _interp_matrix(out_size, in_size):
    scale = in_size / out_size
    dst = np.arange(out_size, dtype=np.float64)
    src = np.maximum((dst + 0.5) * scale - 0.5, 0.0)
    i0 = np.minimum(np.floor(src).astype(np.int64), in_size - 1)
    i1 = np.minimum(i0 + 1, in_size - 1)
    frac = src - i0
    m = np.zeros((out_size, in_size), dtype=np.float32)
    m[np.arange(out_size), i0] += (1.0 - frac).astype(np.float32)
    m[np.arange(out_size), i1] += frac.astype(np.float32)
    return jnp.asarray(m)


def _interp_kernel(m_ref, x_ref, o_ref):
    o_ref[0] = jnp.dot(m_ref[...], x_ref[0].astype(jnp.float32),
                       preferred_element_type=jnp.float32).astype(o_ref.dtype)


def _axis_interp(x3, mat):
    """x3: (N, S, L) -> (N, OS, L), contraction over S with interp matrix."""
    N, S, L = x3.shape
    OS = mat.shape[0]
    tl = L
    if L % 128 == 0:
        for cand in (4096, 2048, 1024, 512, 256, 128):
            if cand <= L and L % cand == 0:
                tl = cand
                break
    num_l = L // tl
    return pl.pallas_call(
        _interp_kernel,
        out_shape=jax.ShapeDtypeStruct((N, OS, L), x3.dtype),
        grid=(N, num_l),
        in_specs=[pl.BlockSpec((OS, S), lambda n, l: (0, 0)),
                  pl.BlockSpec((1, S, tl), lambda n, l: (n, 0, l))],
        out_specs=pl.BlockSpec((1, OS, tl), lambda n, l: (n, 0, l)),
        compiler_params=_cp(("parallel", "parallel")),
    )(mat, x3)


def bilinear_resize(x, out_h, out_w):
    """Matches F.interpolate(mode='bilinear', align_corners=False). x: NHWC."""
    N, H, W, C = x.shape
    if (out_h, out_w) == (H, W):
        return x
    y = _axis_interp(x.reshape(N, H, W * C), _interp_matrix(out_h, H))
    y = y.reshape(N, out_h, W, C).transpose(0, 2, 1, 3)          # (N, W, OH, C)
    z = _axis_interp(y.reshape(N, W, out_h * C), _interp_matrix(out_w, W))
    return z.reshape(N, out_w, out_h, C).transpose(0, 2, 1, 3)   # (N, OH, OW, C)


# ----------------------------------------------------------------------------
# MobileNetV3-Large (dilated) backbone config, torchvision layout
# ----------------------------------------------------------------------------
MBV3_CFG = [
    # (cin, kernel, expanded, cout, use_se, activation, stride, dilation)
    (16, 3, 16, 16, False, "relu", 1, 1),
    (16, 3, 64, 24, False, "relu", 2, 1),
    (24, 3, 72, 24, False, "relu", 1, 1),        # features[3]  -> 'inter' (24ch)
    (24, 5, 72, 40, True, "relu", 2, 1),
    (40, 5, 120, 40, True, "relu", 1, 1),
    (40, 5, 120, 40, True, "relu", 1, 1),        # features[6]  -> 'aux'   (40ch)
    (40, 3, 240, 80, False, "hardswish", 2, 1),
    (80, 3, 200, 80, False, "hardswish", 1, 1),
    (80, 3, 184, 80, False, "hardswish", 1, 1),
    (80, 3, 184, 80, False, "hardswish", 1, 1),
    (80, 3, 480, 112, True, "hardswish", 1, 1),
    (112, 3, 672, 112, True, "hardswish", 1, 1),
    (112, 5, 672, 160, True, "hardswish", 2, 2),  # dilated -> stride forced to 1
    (160, 5, 960, 160, True, "hardswish", 1, 2),
    (160, 5, 960, 160, True, "hardswish", 1, 2),
]


def _make_divisible(v, divisor=8):
    new_v = max(divisor, int(v + divisor / 2) // divisor * divisor)
    if new_v < 0.9 * v:
        new_v += divisor
    return new_v


# ----------------------------------------------------------------------------
# Deterministic parameter construction
# ----------------------------------------------------------------------------
class _Init:
    def __init__(self, seed=0):
        self.key = jax.random.PRNGKey(seed)

    def _next(self):
        self.key, k = jax.random.split(self.key)
        return k

    def conv(self, k_in, c_out, bn=True):
        w = (jax.random.normal(self._next(), (k_in, c_out), jnp.float32)
             / np.sqrt(k_in)).astype(jnp.bfloat16)
        if bn:
            s = 1.0 + 0.05 * jax.random.normal(self._next(), (c_out,), jnp.float32)
        else:
            s = jnp.ones((c_out,), jnp.float32)
        b = 0.05 * jax.random.normal(self._next(), (c_out,), jnp.float32)
        return {"w": w, "s": s, "b": b}

    def dw(self, k, c):
        w = jax.random.normal(self._next(), (k * k, c), jnp.float32) / float(k)
        s = 1.0 + 0.05 * jax.random.normal(self._next(), (c,), jnp.float32)
        b = 0.05 * jax.random.normal(self._next(), (c,), jnp.float32)
        return {"w": w, "s": s, "b": b}


def build_params(num_classes=NUM_CLASSES, seed=0):
    init = _Init(seed)
    P = {"stem": init.conv(3 * 3 * 3, 16)}
    blocks = []
    for (cin, k, exp, cout, use_se, _act_, _s_, _d_) in MBV3_CFG:
        blk = {}
        if exp != cin:
            blk["expand"] = init.conv(cin, exp)
        blk["dw"] = init.dw(k, exp)
        if use_se:
            sq = _make_divisible(exp // 4, 8)
            blk["se_fc1"] = init.conv(exp, sq, bn=False)
            blk["se_fc2"] = init.conv(sq, exp, bn=False)
        blk["project"] = init.conv(exp, cout)
        blocks.append(blk)
    P["blocks"] = blocks
    P["last"] = init.conv(160, 960)
    # ASPP(960, rates=[12, 24, 36], out=256)
    P["aspp_b0"] = init.conv(960, 256)
    P["aspp_b1"] = init.conv(9 * 960, 256)
    P["aspp_b2"] = init.conv(9 * 960, 256)
    P["aspp_b3"] = init.conv(9 * 960, 256)
    P["aspp_pool"] = init.conv(960, 256)
    P["aspp_proj"] = init.conv(5 * 256, 256)
    # Custom decode head
    P["conv"] = init.conv(9 * (24 + 40 + 256), 256)      # ConvBNAct(320, 256, 3)
    P["se_fc1"] = init.conv(256, 16, bn=False)           # SEBlock(256), reduction 16
    P["se_fc2"] = init.conv(16, 256, bn=False)
    P["head0"] = init.conv(9 * 256, 256)
    P["head1"] = init.conv(256, num_classes, bn=False)
    P["edge0"] = init.conv(9 * 24, 24)
    P["edge1"] = init.conv(24, 1, bn=False)
    P["aux0"] = init.conv(9 * 40, 40)
    P["aux1"] = init.conv(40, num_classes, bn=False)
    return P


# ----------------------------------------------------------------------------
# Forward pass
# ----------------------------------------------------------------------------
def inverted_residual(x, cfg, p):
    cin, k, exp, cout, use_se, act, stride, dilation = cfg
    stride = 1 if dilation > 1 else stride
    use_res = (stride == 1 and cin == cout)
    h = x
    if exp != cin:
        h = conv2d(h, p["expand"], 1, act=act)
    pad = (k // 2) * dilation
    h = depthwise_conv(h, p["dw"], k, stride, pad, dilation, act=act)
    if use_se:
        h = squeeze_excite(h, p["se_fc1"], p["se_fc2"], gate_act="hardsigmoid")
    # 1x1 projection with the residual add fused into the matmul epilogue
    N, H, W, C = h.shape
    res = x.reshape(N * H * W, cout) if use_res else None
    y = matmul_bias_act(h.reshape(N * H * W, C), p["project"]["w"],
                        p["project"]["s"], p["project"]["b"], act="none",
                        residual=res)
    return y.reshape(N, H, W, cout)


def backbone_forward(x, P):
    h = conv2d(x, P["stem"], 3, stride=2, padding=1, act="hardswish")
    feats = {}
    for idx, (cfg, bp) in enumerate(zip(MBV3_CFG, P["blocks"])):
        h = inverted_residual(h, cfg, bp)
        if idx == 2:
            feats["inter"] = h
        elif idx == 5:
            feats["aux"] = h
    feats["out"] = conv2d(h, P["last"], 1, act="hardswish")
    return feats


def aspp_forward(x, P):
    b0 = conv2d(x, P["aspp_b0"], 1, act="relu")
    b1 = conv2d(x, P["aspp_b1"], 3, padding=12, dilation=12, act="relu")
    b2 = conv2d(x, P["aspp_b2"], 3, padding=24, dilation=24, act="relu")
    b3 = conv2d(x, P["aspp_b3"], 3, padding=36, dilation=36, act="relu")
    N, H, W, _ = x.shape
    pooled = global_avg_pool(x)
    pg = matmul_bias_act(pooled, P["aspp_pool"]["w"], P["aspp_pool"]["s"],
                         P["aspp_pool"]["b"], "relu")
    # bilinear upsample of a 1x1 map == broadcast
    b4 = jnp.broadcast_to(pg.reshape(N, 1, 1, -1), (N, H, W, pg.shape[-1]))
    cat = jnp.concatenate([b0, b1, b2, b3, b4], axis=-1)
    # Dropout(0.5) of the ASPP projection -> identity (inference semantics)
    return conv2d(cat, P["aspp_proj"], 1, act="relu")


def deeplabv3_forward(params, x_nchw):
    x = jnp.transpose(x_nchw, (0, 2, 3, 1)).astype(jnp.float32)     # NCHW -> NHWC
    in_h, in_w = x.shape[1], x.shape[2]
    feats = backbone_forward(x, params)

    a = aspp_forward(feats["out"], params)
    x16 = bilinear_resize(a, a.shape[1] * 4, a.shape[2] * 4)
    x8 = bilinear_resize(feats["aux"], feats["aux"].shape[1] * 2,
                         feats["aux"].shape[2] * 2)
    y = jnp.concatenate([x16, x8, feats["inter"]], axis=-1)         # CatLayer
    y = conv2d(y, params["conv"], 3, padding=1, act="relu")         # ConvBNAct
    # AddLayer(use_relu=True)(y, SE(y)) fused: relu(y * (1 + gate))
    y = squeeze_excite(y, params["se_fc1"], params["se_fc2"], gate_act="sigmoid",
                       add_residual=True, relu=True)

    out = conv2d(y, params["head0"], 3, padding=1, act="relu")
    out = conv2d(out, params["head1"], 1, act="none", out_dtype=jnp.float32)
    out = bilinear_resize(out, in_h, in_w)

    edge = conv2d(feats["inter"], params["edge0"], 3, padding=1, act="relu")
    edge = conv2d(edge, params["edge1"], 1, act="none", out_dtype=jnp.float32)
    edge = bilinear_resize(edge, in_h, in_w)

    aux = conv2d(feats["aux"], params["aux0"], 3, padding=1, act="relu")
    aux = conv2d(aux, params["aux1"], 1, act="none", out_dtype=jnp.float32)
    aux = bilinear_resize(aux, in_h, in_w)

    to_nchw = lambda t: jnp.transpose(t, (0, 3, 1, 2))
    return {"out": to_nchw(out), "edge": to_nchw(edge), "aux": to_nchw(aux)}


# ----------------------------------------------------------------------------
if __name__ == "__main__":
    key = jax.random.PRNGKey(0)
    x = jax.random.normal(key, (2, 3, 32, 32), jnp.float32)     # NCHW, like PyTorch
    params = build_params()
    result = deeplabv3_forward(params, x)
    jax.block_until_ready(result)
    assert result["out"].shape == (2, NUM_CLASSES, 32, 32)
    assert result["edge"].shape == (2, 1, 32, 32)
    assert result["aux"].shape == (2, NUM_CLASSES, 32, 32)
    assert result["out"].dtype == jnp.float32
    print("KERNEL_OK")
</pallas_src>

<mosaic_0001>
module attributes {stable_mosaic.version = 11 : i64} {
  func.func @_mm_kernel(%arg0: i32, %arg1: memref<512x27xbf16, #tpu.memory_space<vmem>>, %arg2: memref<27x128xbf16, #tpu.memory_space<vmem>>, %arg3: memref<1x128xf32, #tpu.memory_space<vmem>>, %arg4: memref<1x128xf32, #tpu.memory_space<vmem>>, %arg5: memref<512x128xbf16, #tpu.memory_space<vmem>>) attributes {dimension_semantics = [#tpu.dimension_semantics<parallel>], iteration_bounds = array<i64: 1>, scalar_prefetch = 0 : i64, scratch_operands = 0 : i64, tpu.core_type = #tpu.core_type<tc>, window_params = [{transform_indices = @transform_0, window_bounds = array<i64: 512, 27>}, {pipeline_mode = #tpu.pipeline_mode<synchronous>, transform_indices = @transform_1, window_bounds = array<i64: 27, 128>}, {pipeline_mode = #tpu.pipeline_mode<synchronous>, transform_indices = @transform_2, window_bounds = array<i64: 1, 128>}, {pipeline_mode = #tpu.pipeline_mode<synchronous>, transform_indices = @transform_3, window_bounds = array<i64: 1, 128>}, {transform_indices = @transform_4, window_bounds = array<i64: 512, 128>}]} {
    %c0 = arith.constant 0 : index
    %c0_0 = arith.constant 0 : index
    %0 = vector.load %arg1[%c0, %c0_0] : memref<512x27xbf16, #tpu.memory_space<vmem>>, vector<512x27xbf16>
    %c0_1 = arith.constant 0 : index
    %c0_2 = arith.constant 0 : index
    %1 = vector.load %arg2[%c0_1, %c0_2] : memref<27x128xbf16, #tpu.memory_space<vmem>>, vector<27x128xbf16>
    %cst = arith.constant dense<0.000000e+00> : vector<512x128xf32>
    %2 = tpu.matmul %0, %1, %cst {dimension_numbers = #tpu.dot_dimension_numbers<[1], [0], [0], [1], [0, 0, 1, 1], [], []>} : vector<512x27xbf16>, vector<27x128xbf16>, vector<512x128xf32> -> vector<512x128xf32>
    %c0_3 = arith.constant 0 : index
    %c0_4 = arith.constant 0 : index
    %3 = vector.load %arg3[%c0_3, %c0_4] : memref<1x128xf32, #tpu.memory_space<vmem>>, vector<1x128xf32>
    %4 = vector.broadcast %3 : vector<1x128xf32> to vector<512x128xf32>
    %5 = arith.mulf %2, %4 : vector<512x128xf32>
    %c0_5 = arith.constant 0 : index
    %c0_6 = arith.constant 0 : index
    %6 = vector.load %arg4[%c0_5, %c0_6] : memref<1x128xf32, #tpu.memory_space<vmem>>, vector<1x128xf32>
    %7 = vector.broadcast %6 : vector<1x128xf32> to vector<512x128xf32>
    %8 = arith.addf %5, %7 : vector<512x128xf32>
    %cst_7 = arith.constant 3.000000e+00 : f32
    %9 = vector.broadcast %cst_7 : f32 to vector<512x128xf32>
    %10 = arith.addf %8, %9 : vector<512x128xf32>
    %cst_8 = arith.constant 0.000000e+00 : f32
    %cst_9 = arith.constant 6.000000e+00 : f32
    %11 = vector.broadcast %cst_8 : f32 to vector<512x128xf32>
    %12 = arith.maximumf %11, %10 : vector<512x128xf32>
    %13 = vector.broadcast %cst_9 : f32 to vector<512x128xf32>
    %14 = arith.minimumf %13, %12 : vector<512x128xf32>
    %15 = arith.mulf %8, %14 : vector<512x128xf32>
    %cst_10 = arith.constant 0.166666672 : f32
    %16 = vector.broadcast %cst_10 : f32 to vector<512x128xf32>
    %17 = arith.mulf %15, %16 : vector<512x128xf32>
    %18 = arith.truncf %17 : vector<512x128xf32> to vector<512x128xbf16>
    %c0_11 = arith.constant 0 : index
    %c0_12 = arith.constant 0 : index
    %19 = vector.load %arg5[%c0_11, %c0_12] : memref<512x128xbf16, #tpu.memory_space<vmem>>, vector<512x128xbf16>
    tpu.vector_store %arg5[%c0_11, %c0_12], %18 {strides = array<i32>} : memref<512x128xbf16, #tpu.memory_space<vmem>>, vector<512x128xbf16>,
    return
  }
  func.func @transform_0(%arg0: i32) -> (i32, i32) {
    %c0_i32 = arith.constant 0 : i32
    %c0_i32_0 = arith.constant 0 : i32
    return %arg0, %c0_i32 : i32, i32
  }
  func.func @transform_1(%arg0: i32) -> (i32, i32) {
    %c0_i32 = arith.constant 0 : i32
    %c0_i32_0 = arith.constant 0 : i32
    %c0_i32_1 = arith.constant 0 : i32
    return %c0_i32, %c0_i32_0 : i32, i32
  }
  func.func @transform_2(%arg0: i32) -> (i32, i32) {
    %c0_i32 = arith.constant 0 : i32
    %c0_i32_0 = arith.constant 0 : i32
    %c0_i32_1 = arith.constant 0 : i32
    return %c0_i32, %c0_i32_0 : i32, i32
  }
  func.func @transform_3(%arg0: i32) -> (i32, i32) {
    %c0_i32 = arith.constant 0 : i32
    %c0_i32_0 = arith.constant 0 : i32
    %c0_i32_1 = arith.constant 0 : i32
    return %c0_i32, %c0_i32_0 : i32, i32
  }
  func.func @transform_4(%arg0: i32) -> (i32, i32) {
    %c0_i32 = arith.constant 0 : i32
    %c0_i32_0 = arith.constant 0 : i32
    return %arg0, %c0_i32 : i32, i32
  }
}

</mosaic_0001>

<bundles_post_ra>
// kernel: tpu_custom_call.1
= control target key start
LH: loop header
LB: loop body
LE: loop exit
PB: predicated region body
PF: predicated region fallthrough
CT: control target
= control target key end

     0   :  { %vm355_vm0 = vcmask 1044480   ;;  %vm356_vm1 = vcmask 1045504   ;;  %v2004_v1 = vmov 65535   ;;  %vm258_vm2 = vcmask 220160   ;;  %s2380_s0 = inlined_call_operand.vmem [shape: bf16[512,27], index: 0, kind: input, shape index: {}]   ;;  %s2381_s1 = inlined_call_operand.vmem [shape: bf16[27,128], index: 1, kind: input, shape index: {}]   ;;  %s2382_s2 = inlined_call_operand.vmem [shape: f32[1,128], index: 2, kind: input, shape index: {}]   ;;  %s2383_s3 = inlined_call_operand.vmem [shape: f32[1,128], index: 3, kind: input, shape index: {}]   ;;  %s2384_s4 = inlined_call_operand.hbm [shape: bf16[512,128], index: 4, kind: output, shape index: {}]  }
   0x1   :  { %v1946_v0 = vld [vmem:[%s2381_s1 + $0x8] sm:$0x3f]   ;;  %v357_v2 = vsel %vm355_vm0, 4294967295, %v2004_v1  ;;  %v1948_v3 = vld [vmem:[%s2380_s0] sm:$0xff]   ;;  %v1952_v10 = vld [vmem:[%s2380_s0 + $0x10] sm:$0xff]  }
   0x2   :  { %v358_v4 = vsel %vm356_vm1, %v357_v2, 0  ;;  %v1947_v6 = vld [vmem:[%s2381_s1] sm:$0xff]   ;;  %1874 = vmatprep.mubr.msk.bf16.mxu0 %vm258_vm2, %v1948_v3  ;;  %v1950_v8 = vld [vmem:[%s2380_s0 + $0x8] sm:$0xff]   ;;  %v1953_v11 = vld [vmem:[%s2380_s0 + $0x90] sm:$0xff]  }
   0x3   :  { %v360_v5 = vand.u32 %v1946_v0, %v358_v4  ;;  %v1949_v7 = vld [vmem:[%s2380_s0 + $0x80] sm:$0xff]   ;;  %v1951_v9 = vld [vmem:[%s2380_s0 + $0x88] sm:$0xff]   ;;  %v1954_v12 = vld [vmem:[%s2380_s0 + $0x18] sm:$0xff]  }
   0x4   :  { %1906 = vmatprep.mubr.msk.bf16.mxu1 %vm258_vm2, %v1949_v7  ;;  %v1955_v13 = vld [vmem:[%s2380_s0 + $0x98] sm:$0xff]   ;;  %v1956_v14 = vld [vmem:[%s2380_s0 + $0x20] sm:$0xff]   ;;  %v1958_v16 = vld [vmem:[%s2380_s0 + $0x28] sm:$0xff]  }
   0x5   :  { %1870 = vmatprep.subr.bf16.mxu0 %v360_v5  ;;  %1938 = vmatprep.subr.bf16.mxu1 %v360_v5  ;;  %v1957_v15 = vld [vmem:[%s2380_s0 + $0xa0] sm:$0xff]   ;;  %v1959_v17 = vld [vmem:[%s2380_s0 + $0xa8] sm:$0xff]   ;;  %v1960_v18 = vld [vmem:[%s2380_s0 + $0x30] sm:$0xff]  }
   0x6   :  { %1871 = vmatpush3.bf16.msra.mxu0 %v360_v5  ;;  %1940 = vmatpush3.bf16.msra.mxu1 %v360_v5  ;;  %v1961_v19 = vld [vmem:[%s2380_s0 + $0xb0] sm:$0xff]   ;;  %v1962_v20 = vld [vmem:[%s2380_s0 + $0x38] sm:$0xff]  }
   0x7   :  { %1872 = vmatprep.subr.bf16.mxu0 %v1947_v6  ;;  %1939 = vmatprep.subr.bf16.mxu1 %v1947_v6  ;;  %v1963_v21 = vld [vmem:[%s2380_s0 + $0xb8] sm:$0xff]  }
   0xa   :  { %1873 = vmatpush3.bf16.msra.mxu0 %v1947_v6  ;;  %1941 = vmatpush3.bf16.msra.mxu1 %v1947_v6 }
   0xd   :  { %1875 = vmatmul.mubr.msk.bf16.vlgmr.msra.gmra.mxu0 %vm258_vm2, %v1950_v8  ;;  %1907 = vmatmul.mubr.msk.bf16.vlgmr.msra.gmra.mxu1 %vm258_vm2, %v1951_v9 }
   0xe   :  { %1878 = vmatprep.mubr.msk.bf16.mxu0 %vm258_vm2, %v1952_v10  ;;  %1910 = vmatprep.mubr.msk.bf16.mxu1 %vm258_vm2, %v1953_v11 }
  0x15   :  { %1879 = vmatmul.mubr.msk.bf16.gmra.mxu0 %vm258_vm2, %v1954_v12  ;;  %1911 = vmatmul.mubr.msk.bf16.gmra.mxu1 %vm258_vm2, %v1955_v13 }
  0x16   :  { %1882 = vmatprep.mubr.msk.bf16.mxu0 %vm258_vm2, %v1956_v14  ;;  %1914 = vmatprep.mubr.msk.bf16.mxu1 %vm258_vm2, %v1957_v15 }
  0x1d   :  { %1883 = vmatmul.mubr.msk.bf16.gmra.mxu0 %vm258_vm2, %v1958_v16  ;;  %1915 = vmatmul.mubr.msk.bf16.gmra.mxu1 %vm258_vm2, %v1959_v17 }
  0x1e   :  { %1886 = vmatprep.mubr.msk.bf16.mxu0 %vm258_vm2, %v1960_v18  ;;  %1918 = vmatprep.mubr.msk.bf16.mxu1 %vm258_vm2, %v1961_v19 }
  0x1f   :  { %9 = vsyncpa [#allocation3], 0  ;;  %v1964_v22 = vld [vmem:[%s2380_s0 + $0x40] sm:$0xff]   ;;  %v1966_v24 = vld [vmem:[%s2380_s0 + $0x48] sm:$0xff]  }
  0x20   :  { %v1965_v23 = vld [vmem:[%s2380_s0 + $0xc0] sm:$0xff]   ;;  %v1967_v25 = vld [vmem:[%s2380_s0 + $0xc8] sm:$0xff]   ;;  %v1968_v26 = vld [vmem:[%s2380_s0 + $0x50] sm:$0xff]  }
  0x21   :  { %v1969_v27 = vld [vmem:[%s2380_s0 + $0xd0] sm:$0xff]   ;;  %v1970_v28 = vld [vmem:[%s2380_s0 + $0x58] sm:$0xff]   ;;  %v1972_v30 = vld [vmem:[%s2380_s0 + $0x60] sm:$0xff]  }
  0x22   :  { %v1971_v29 = vld [vmem:[%s2380_s0 + $0xd8] sm:$0xff]   ;;  %v1973_v31 = vld [vmem:[%s2380_s0 + $0xe0] sm:$0xff]   ;;  %v1974_v32 = vld [vmem:[%s2380_s0 + $0x68] sm:$0xff]  }
  0x23   :  { %v1975_v33 = vld [vmem:[%s2380_s0 + $0xe8] sm:$0xff]   ;;  %v1976_v34 = vld [vmem:[%s2380_s0 + $0x70] sm:$0xff]   ;;  %v1978_v36 = vld [vmem:[%s2380_s0 + $0x78] sm:$0xff]  }
  0x24   :  { %v1977_v35 = vld [vmem:[%s2380_s0 + $0xf0] sm:$0xff]   ;;  %v1979_v37 = vld [vmem:[%s2380_s0 + $0xf8] sm:$0xff]   ;;  %v2170_v38 = vld [vmem:[%s2382_s2] ss:$0 sm:$0xff] }
  0x25   :  { %1887 = vmatmul.mubr.msk.bf16.gmra.mxu0 %vm258_vm2, %v1962_v20  ;;  %1919 = vmatmul.mubr.msk.bf16.gmra.mxu1 %vm258_vm2, %v1963_v21  ;;  %v2175_v40 = vld [vmem:[%s2383_s3] ss:$0 sm:$0xff] }
  0x26   :  { %1890 = vmatprep.mubr.msk.bf16.mxu0 %vm258_vm2, %v1964_v22  ;;  %1922 = vmatprep.mubr.msk.bf16.mxu1 %vm258_vm2, %v1965_v23 }
  0x2d   :  { %1891 = vmatmul.mubr.msk.bf16.gmra.mxu0 %vm258_vm2, %v1966_v24  ;;  %1923 = vmatmul.mubr.msk.bf16.gmra.mxu1 %vm258_vm2, %v1967_v25 }
  0x2e   :  { %1894 = vmatprep.mubr.msk.bf16.mxu0 %vm258_vm2, %v1968_v26  ;;  %1926 = vmatprep.mubr.msk.bf16.mxu1 %vm258_vm2, %v1969_v27 }
  0x35   :  { %1895 = vmatmul.mubr.msk.bf16.gmra.mxu0 %vm258_vm2, %v1970_v28  ;;  %1927 = vmatmul.mubr.msk.bf16.gmra.mxu1 %vm258_vm2, %v1971_v29 }
  0x36   :  { %1898 = vmatprep.mubr.msk.bf16.mxu0 %vm258_vm2, %v1972_v30  ;;  %1930 = vmatprep.mubr.msk.bf16.mxu1 %vm258_vm2, %v1973_v31 }
  0x3d   :  { %1899 = vmatmul.mubr.msk.bf16.gmra.mxu0 %vm258_vm2, %v1974_v32  ;;  %1931 = vmatmul.mubr.msk.bf16.gmra.mxu1 %vm258_vm2, %v1975_v33 }
  0x3e   :  { %1902 = vmatprep.mubr.msk.bf16.mxu0 %vm258_vm2, %v1976_v34  ;;  %1934 = vmatprep.mubr.msk.bf16.mxu1 %vm258_vm2, %v1977_v35 }
  0x45   :  { %1903 = vmatmul.mubr.msk.bf16.gmra.mxu0 %vm258_vm2, %v1978_v36  ;;  %1935 = vmatmul.mubr.msk.bf16.gmra.mxu1 %vm258_vm2, %v1979_v37 }
  0xcd   :  { %v1876_v39 = vpop.f32.mrf.mxu0  ;;  %v1908_v41 = vpop.f32.mrf.mxu1 }
  0xce   :  { %v660_v42 = vmul.f32 %v1876_v39, %v2170_v38  ;;  %v692_v43 = vmul.f32 %v1908_v41, %v2170_v38 }
  0xcf   :  { %v396_v44 = vpop.f32.mrf.mxu0  ;;  %v524_v45 = vpop.f32.mrf.mxu1 }
  0xd0   :  { %v731_v46 = vadd.f32 %v2175_v40, %v660_v42  ;;  %v763_v47 = vadd.f32 %v2175_v40, %v692_v43  ;;  %v658_v48 = vmul.f32 %v2170_v38, %v396_v44  ;;  %v690_v49 = vmul.f32 %v2170_v38, %v524_v45 }
  0xd1   :  { %v1877_v50 = vpop.f32.mrf.mxu0  ;;  %v1909_v51 = vpop.f32.mrf.mxu1 }
  0xd2   :  { %v795_v52 = vadd.f32 3.0, %v731_v46  ;;  %v827_v53 = vadd.f32 3.0, %v763_v47  ;;  %v729_v54 = vadd.f32 %v2175_v40, %v658_v48  ;;  %v761_v55 = vadd.f32 %v2175_v40, %v690_v49 }
  0xd3   :  { %v661_v56 = vmul.f32 %v1877_v50, %v2170_v38  ;;  %v693_v57 = vmul.f32 %v1909_v51, %v2170_v38  ;;  %v399_v58 = vpop.f32.mrf.mxu0  ;;  %v527_v59 = vpop.f32.mrf.mxu1 }
  0xd4   :  { %v859_v60 = vmax.f32 %v795_v52, 0.0  ;;  %v891_v61 = vmax.f32 %v827_v53, 0.0  ;;  %v793_v62 = vadd.f32 3.0, %v729_v54  ;;  %v825_v63 = vadd.f32 3.0, %v761_v55 }
  0xd5   :  { %v732_v0 = vadd.f32 %v2175_v40, %v661_v56  ;;  %v764_v1 = vadd.f32 %v2175_v40, %v693_v57  ;;  %v659_v2 = vmul.f32 %v2170_v38, %v399_v58  ;;  %v691_v3 = vmul.f32 %v2170_v38, %v527_v59  ;;  %v1880_v4 = vpop.f32.mrf.mxu0  ;;  %v1912_v5 = vpop.f32.mrf.mxu1 }
  0xd6   :  { %v923_v6 = vmin.f32 %v859_v60, 6.0  ;;  %v955_v7 = vmin.f32 %v891_v61, 6.0  ;;  %v857_v8 = vmax.f32 %v793_v62, 0.0  ;;  %v889_v9 = vmax.f32 %v825_v63, 0.0 }
  0xd7   :  { %v796_v10 = vadd.f32 3.0, %v732_v0  ;;  %v828_v11 = vadd.f32 3.0, %v764_v1  ;;  %v730_v12 = vadd.f32 %v2175_v40, %v659_v2  ;;  %v762_v13 = vadd.f32 %v2175_v40, %v691_v3  ;;  %v412_v14 = vpop.f32.mrf.mxu0  ;;  %v540_v15 = vpop.f32.mrf.mxu1 }
  0xd8   :  { %v987_v16 = vmul.f32 %v923_v6, %v731_v46  ;;  %v1019_v17 = vmul.f32 %v955_v7, %v763_v47  ;;  %v921_v18 = vmin.f32 %v857_v8, 6.0  ;;  %v953_v19 = vmin.f32 %v889_v9, 6.0 }
  0xd9   :  { %v860_v20 = vmax.f32 %v796_v10, 0.0  ;;  %v892_v21 = vmax.f32 %v828_v11, 0.0  ;;  %v794_v22 = vadd.f32 3.0, %v730_v12  ;;  %v826_v23 = vadd.f32 3.0, %v762_v13  ;;  %v1881_v24 = vpop.f32.mrf.mxu0  ;;  %v1913_v25 = vpop.f32.mrf.mxu1 }
  0xda   :  { %v1051_v26 = vmul.f32 0.16666667, %v987_v16  ;;  %v1083_v27 = vmul.f32 0.16666667, %v1019_v17  ;;  %v985_v28 = vmul.f32 %v921_v18, %v729_v54  ;;  %v1017_v29 = vmul.f32 %v953_v19, %v761_v55 }
  0xdb   :  { %v924_v30 = vmin.f32 %v860_v20, 6.0  ;;  %v956_v31 = vmin.f32 %v892_v21, 6.0  ;;  %v858_v32 = vmax.f32 %v794_v22, 0.0  ;;  %v890_v33 = vmax.f32 %v826_v23, 0.0  ;;  %v415_v34 = vpop.f32.mrf.mxu0  ;;  %v543_v35 = vpop.f32.mrf.mxu1 }
  0xdc   :  { %v1049_v36 = vmul.f32 0.16666667, %v985_v28  ;;  %v1081_v37 = vmul.f32 0.16666667, %v1017_v29  ;;  %v664_v39 = vmul.f32 %v1880_v4, %v2170_v38  ;;  %v696_v41 = vmul.f32 %v1912_v5, %v2170_v38 }
  0xdd   :  { %v988_v42 = vmul.f32 %v924_v30, %v732_v0  ;;  %v1020_v43 = vmul.f32 %v956_v31, %v764_v1  ;;  %v922_v44 = vmin.f32 %v858_v32, 6.0  ;;  %v954_v45 = vmin.f32 %v890_v33, 6.0  ;;  %v1884_v46 = vpop.f32.mrf.mxu0  ;;  %v1916_v47 = vpop.f32.mrf.mxu1 }
  0xde   :  { %v735_v48 = vadd.f32 %v2175_v40, %v664_v39  ;;  %v767_v49 = vadd.f32 %v2175_v40, %v696_v41  ;;  %v662_v50 = vmul.f32 %v2170_v38, %v412_v14  ;;  %v694_v51 = vmul.f32 %v2170_v38, %v540_v15 }
  0xdf   :  { %v1052_v52 = vmul.f32 0.16666667, %v988_v42  ;;  %v1084_v53 = vmul.f32 0.16666667, %v1020_v43  ;;  %v986_v54 = vmul.f32 %v922_v44, %v730_v12  ;;  %v1018_v55 = vmul.f32 %v954_v45, %v762_v13  ;;  %v428_v0 = vpop.f32.mrf.mxu0  ;;  %v556_v1 = vpop.f32.mrf.mxu1 }
  0xe0   :  { %v799_v56 = vadd.f32 3.0, %v735_v48  ;;  %v831_v57 = vadd.f32 3.0, %v767_v49  ;;  %v733_v58 = vadd.f32 %v2175_v40, %v662_v50  ;;  %v765_v59 = vadd.f32 %v2175_v40, %v694_v51 }
  0xe1   :  { %v1653_v60 = vpack.c.bf16 %v1052_v52, %v1051_v26  ;;  %v1733_v61 = vpack.c.bf16 %v1084_v53, %v1083_v27  ;;  %v1050_v62 = vmul.f32 0.16666667, %v986_v54  ;;  %v1082_v63 = vmul.f32 0.16666667, %v1018_v55  ;;  %v2207_v18 = vpop.f32.mrf.mxu0  ;;  %v2209_v19 = vpop.f32.mrf.mxu1 }
  0xe2   :  { %v863_v2 = vmax.f32 %v799_v56, 0.0  ;;  %v895_v3 = vmax.f32 %v831_v57, 0.0  ;;  %v797_v4 = vadd.f32 3.0, %v733_v58  ;;  %v829_v5 = vadd.f32 3.0, %v765_v59 }
  0xe3   :  { %1805 = vst [vmem:[#allocation2 + $0x8] sm:$0xff] %v1653_v60   ;;  %1821 = vst [vmem:[#allocation2 + $0x88] sm:$0xff] %v1733_v61   ;;  %v1648_v6 = vpack.c.bf16 %v1050_v62, %v1049_v36  ;;  %v1728_v7 = vpack.c.bf16 %v1082_v63, %v1081_v37  ;;  %v665_v8 = vmul.f32 %v1881_v24, %v2170_v38  ;;  %v431_v36 = vpop.f32.mrf.mxu0  ;;  %v559_v37 = vpop.f32.mrf.mxu1 }
  0xe4   :  { %v697_v9 = vmul.f32 %v1913_v25, %v2170_v38  ;;  %v927_v10 = vmin.f32 %v863_v2, 6.0  ;;  %v959_v11 = vmin.f32 %v895_v3, 6.0  ;;  %v861_v12 = vmax.f32 %v797_v4, 0.0 }
  0xe5   :  { %v893_v13 = vmax.f32 %v829_v5, 0.0  ;;  %1649 = vst [vmem:[#allocation2] sm:$0xff] %v1648_v6   ;;  %1820 = vst [vmem:[#allocation2 + $0x80] sm:$0xff] %v1728_v7   ;;  %v736_v14 = vadd.f32 %v2175_v40, %v665_v8  ;;  %v663_v16 = vmul.f32 %v2170_v38, %v415_v34  ;;  %v695_v17 = vmul.f32 %v2170_v38, %v543_v35 }
  0xe6   :  { %v768_v15 = vadd.f32 %v2175_v40, %v697_v9  ;;  %v991_v20 = vmul.f32 %v927_v10, %v735_v48  ;;  %v1023_v21 = vmul.f32 %v959_v11, %v767_v49  ;;  %v925_v22 = vmin.f32 %v861_v12, 6.0 }
  0xe7   :  { %v957_v23 = vmin.f32 %v893_v13, 6.0  ;;  %v800_v24 = vadd.f32 3.0, %v736_v14  ;;  %v734_v26 = vadd.f32 %v2175_v40, %v663_v16  ;;  %v766_v27 = vadd.f32 %v2175_v40, %v695_v17 }
  0xe8   :  { %v832_v25 = vadd.f32 3.0, %v768_v15  ;;  %v1055_v28 = vmul.f32 0.16666667, %v991_v20  ;;  %v1087_v29 = vmul.f32 0.16666667, %v1023_v21  ;;  %v989_v30 = vmul.f32 %v925_v22, %v733_v58  ;;  %v1888_v58 = vpop.f32.mrf.mxu0 }
  0xe9   :  { %v1021_v31 = vmul.f32 %v957_v23, %v765_v59  ;;  %v864_v32 = vmax.f32 %v800_v24, 0.0  ;;  %v798_v34 = vadd.f32 3.0, %v734_v26  ;;  %v830_v35 = vadd.f32 3.0, %v766_v27 }
  0xea   :  { %v896_v33 = vmax.f32 %v832_v25, 0.0  ;;  %v1053_v39 = vmul.f32 0.16666667, %v989_v30  ;;  %v668_v42 = vmul.f32 %v1884_v46, %v2170_v38  ;;  %v700_v43 = vmul.f32 %v1916_v47, %v2170_v38  ;;  %v1920_v46 = vpop.f32.mrf.mxu1  ;;  %v444_v10 = vpop.f32.mrf.mxu0 }
  0xeb   :  { %v1085_v41 = vmul.f32 0.16666667, %v1021_v31  ;;  %v928_v44 = vmin.f32 %v864_v32, 6.0  ;;  %v862_v48 = vmax.f32 %v798_v34, 0.0  ;;  %v894_v49 = vmax.f32 %v830_v35, 0.0 }
  0xec   :  { %v960_v45 = vmin.f32 %v896_v33, 6.0  ;;  %v739_v50 = vadd.f32 %v2175_v40, %v668_v42  ;;  %v771_v51 = vadd.f32 %v2175_v40, %v700_v43  ;;  %v666_v52 = vmul.f32 %v2170_v38, %v428_v0  ;;  %v572_v11 = vpop.f32.mrf.mxu1 }
  0xed   :  { %v698_v53 = vmul.f32 %v2170_v38, %v556_v1  ;;  %v992_v54 = vmul.f32 %v928_v44, %v736_v14  ;;  %v926_v56 = vmin.f32 %v862_v48, 6.0  ;;  %v958_v57 = vmin.f32 %v894_v49, 6.0 }
  0xee   :  { %v1024_v55 = vmul.f32 %v960_v45, %v768_v15  ;;  %v803_v59 = vadd.f32 3.0, %v739_v50  ;;  %v835_v47 = vadd.f32 3.0, %v771_v51  ;;  %v737_v60 = vadd.f32 %v2175_v40, %v666_v52  ;;  %v1921_v30 = vpop.f32.mrf.mxu1 }
  0xef   :  { %v769_v61 = vadd.f32 %v2175_v40, %v698_v53  ;;  %v1056_v62 = vmul.f32 0.16666667, %v992_v54  ;;  %v990_v2 = vmul.f32 %v926_v56, %v734_v26  ;;  %v1022_v3 = vmul.f32 %v958_v57, %v766_v27 }
  0xf0   :  { %v1088_v63 = vmul.f32 0.16666667, %v1024_v55  ;;  %v867_v4 = vmax.f32 %v803_v59, 0.0  ;;  %v899_v0 = vmax.f32 %v835_v47, 0.0  ;;  %v801_v5 = vadd.f32 3.0, %v737_v60  ;;  %v575_v48 = vpop.f32.mrf.mxu1 }
  0xf1   :  { %v833_v1 = vadd.f32 3.0, %v769_v61  ;;  %v1663_v6 = vpack.c.bf16 %v1056_v62, %v1055_v28  ;;  %v1054_v8 = vmul.f32 0.16666667, %v990_v2  ;;  %v1086_v9 = vmul.f32 0.16666667, %v1022_v3 }
  0xf2   :  { %v1743_v7 = vpack.c.bf16 %v1088_v63, %v1087_v29  ;;  %v931_v12 = vmin.f32 %v867_v4, 6.0  ;;  %v963_v13 = vmin.f32 %v899_v0, 6.0  ;;  %v865_v14 = vmax.f32 %v801_v5, 0.0  ;;  %v1889_v29 = vpop.f32.mrf.mxu0  ;;  %v1924_v2 = vpop.f32.mrf.mxu1 }
  0xf3   :  { %v897_v15 = vmax.f32 %v833_v1, 0.0  ;;  %1807 = vst [vmem:[#allocation2 + $0x18] sm:$0xff] %v1663_v6   ;;  %v1658_v16 = vpack.c.bf16 %v1054_v8, %v1053_v39  ;;  %v1738_v17 = vpack.c.bf16 %v1086_v9, %v1085_v41  ;;  %v669_v20 = vmul.f32 %v2207_v18, %v2170_v38 }
  0xf4   :  { %1823 = vst [vmem:[#allocation2 + $0x98] sm:$0xff] %v1743_v7   ;;  %v701_v21 = vmul.f32 %v2209_v19, %v2170_v38  ;;  %v995_v22 = vmul.f32 %v931_v12, %v739_v50  ;;  %v929_v23 = vmin.f32 %v865_v14, 6.0  ;;  %v667_v27 = vmul.f32 %v2170_v38, %v431_v36  ;;  %v447_v45 = vpop.f32.mrf.mxu0 }
  0xf5   :  { %v961_v24 = vmin.f32 %v897_v15, 6.0  ;;  %1806 = vst [vmem:[#allocation2 + $0x10] sm:$0xff] %v1658_v16   ;;  %1822 = vst [vmem:[#allocation2 + $0x90] sm:$0xff] %v1738_v17   ;;  %v740_v25 = vadd.f32 %v2175_v40, %v669_v20  ;;  %v699_v28 = vmul.f32 %v2170_v38, %v559_v37  ;;  %v1027_v18 = vmul.f32 %v963_v13, %v771_v51  ;;  %v588_v20 = vpop.f32.mrf.mxu1 }
  0xf6   :  { %v772_v26 = vadd.f32 %v2175_v40, %v701_v21  ;;  %v1059_v31 = vmul.f32 0.16666667, %v995_v22  ;;  %v738_v19 = vadd.f32 %v2175_v40, %v667_v27  ;;  %v993_v35 = vmul.f32 %v929_v23, %v737_v60  ;;  %v1892_v63 = vpop.f32.mrf.mxu0 }
  0xf7   :  { %v804_v32 = vadd.f32 3.0, %v740_v25  ;;  %v770_v34 = vadd.f32 %v2175_v40, %v699_v28  ;;  %v1025_v39 = vmul.f32 %v961_v24, %v769_v61  ;;  %v672_v41 = vmul.f32 %v1888_v58, %v2170_v38 }
  0xf8   :  { %v836_v33 = vadd.f32 3.0, %v772_v26  ;;  %v704_v42 = vmul.f32 %v1920_v46, %v2170_v38  ;;  %v802_v44 = vadd.f32 3.0, %v738_v19  ;;  %v670_v51 = vmul.f32 %v2170_v38, %v444_v10  ;;  %v460_v17 = vpop.f32.mrf.mxu0 }
  0xf9   :  { %v868_v43 = vmax.f32 %v804_v32, 0.0  ;;  %v834_v37 = vadd.f32 3.0, %v770_v34  ;;  %v743_v49 = vadd.f32 %v2175_v40, %v672_v41  ;;  %v702_v52 = vmul.f32 %v2170_v38, %v572_v11 }
  0xfa   :  { %v900_v36 = vmax.f32 %v836_v33, 0.0  ;;  %v2235_v50 = vadd.f32 %v2175_v40, %v704_v42  ;;  %v866_v55 = vmax.f32 %v802_v44, 0.0  ;;  %v2241_v46 = vadd.f32 %v2175_v40, %v670_v51 }
  0xfb   :  { %v932_v53 = vmin.f32 %v868_v43, 6.0  ;;  %v898_v56 = vmax.f32 %v834_v37, 0.0  ;;  %v807_v57 = vadd.f32 3.0, %v743_v49  ;;  %v2244_v59 = vadd.f32 %v2175_v40, %v702_v52 }
  0xfc   :  { %v964_v54 = vmin.f32 %v900_v36, 6.0  ;;  %v839_v58 = vadd.f32 3.0, %v2235_v50  ;;  %v930_v61 = vmin.f32 %v866_v55, 6.0  ;;  %v1091_v3 = vmul.f32 0.16666667, %v1027_v18 }
  0xfd   :  { %v996_v47 = vmul.f32 %v932_v53, %v740_v25  ;;  %v962_v62 = vmin.f32 %v898_v56, 6.0  ;;  %v871_v4 = vmax.f32 %v807_v57, 0.0  ;;  %v805_v0 = vadd.f32 3.0, %v2241_v46 }
  0xfe   :  { %v1028_v60 = vmul.f32 %v964_v54, %v772_v26  ;;  %v837_v5 = vadd.f32 3.0, %v2244_v59  ;;  %v994_v7 = vmul.f32 %v930_v61, %v738_v19  ;;  %v1057_v9 = vmul.f32 0.16666667, %v993_v35  ;;  %v1893_v19 = vpop.f32.mrf.mxu0 }
  0xff   :  { %v1060_v1 = vmul.f32 0.16666667, %v996_v47  ;;  %v1026_v8 = vmul.f32 %v962_v62, %v770_v34  ;;  %v1089_v10 = vmul.f32 0.16666667, %v1025_v39  ;;  %v935_v11 = vmin.f32 %v871_v4, 6.0  ;;  %v1925_v34 = vpop.f32.mrf.mxu1 }
 0x100   :  { %v1092_v6 = vmul.f32 0.16666667, %v1028_v60  ;;  %v903_v12 = vmax.f32 %v839_v58, 0.0  ;;  %v1058_v15 = vmul.f32 0.16666667, %v994_v7  ;;  %v869_v21 = vmax.f32 %v805_v0, 0.0  ;;  %v463_v54 = vpop.f32.mrf.mxu0 }
 0x101   :  { %v1673_v13 = vpack.c.bf16 %v1060_v1, %v1059_v31  ;;  %v1090_v16 = vmul.f32 0.16666667, %v1026_v8  ;;  %v901_v22 = vmax.f32 %v837_v5, 0.0  ;;  %v673_v25 = vmul.f32 %v1889_v29, %v2170_v38  ;;  %v591_v55 = vpop.f32.mrf.mxu1 }
 0x102   :  { %v1753_v14 = vpack.c.bf16 %v1092_v6, %v1091_v3  ;;  %v1668_v23 = vpack.c.bf16 %v1058_v15, %v1057_v9  ;;  %v705_v26 = vmul.f32 %v1921_v30, %v2170_v38  ;;  %v999_v27 = vmul.f32 %v935_v11, %v743_v49  ;;  %v1896_v7 = vpop.f32.mrf.mxu0 }
 0x103   :  { %1809 = vst [vmem:[#allocation2 + $0x28] sm:$0xff] %v1673_v13   ;;  %v1748_v24 = vpack.c.bf16 %v1090_v16, %v1089_v10  ;;  %v967_v28 = vmin.f32 %v903_v12, 6.0  ;;  %v744_v31 = vadd.f32 %v2175_v40, %v673_v25  ;;  %v671_v32 = vmul.f32 %v2170_v38, %v447_v45  ;;  %v1928_v8 = vpop.f32.mrf.mxu1 }
 0x104   :  { %1825 = vst [vmem:[#allocation2 + $0xa8] sm:$0xff] %v1753_v14   ;;  %1808 = vst [vmem:[#allocation2 + $0x20] sm:$0xff] %v1668_v23   ;;  %v776_v18 = vadd.f32 %v2175_v40, %v705_v26  ;;  %v703_v33 = vmul.f32 %v2170_v38, %v575_v48  ;;  %v933_v35 = vmin.f32 %v869_v21, 6.0  ;;  %v965_v39 = vmin.f32 %v901_v22, 6.0  ;;  %v476_v25 = vpop.f32.mrf.mxu0 }
 0x105   :  { %1824 = vst [vmem:[#allocation2 + $0xa0] sm:$0xff] %v1748_v24   ;;  %v676_v29 = vmul.f32 %v1892_v63, %v2170_v38  ;;  %v708_v30 = vmul.f32 %v1924_v2, %v2170_v38  ;;  %v808_v41 = vadd.f32 3.0, %v744_v31  ;;  %v742_v43 = vadd.f32 %v2175_v40, %v671_v32  ;;  %v604_v26 = vpop.f32.mrf.mxu1 }
 0x106   :  { %v840_v42 = vadd.f32 3.0, %v776_v18  ;;  %v774_v36 = vadd.f32 %v2175_v40, %v703_v33  ;;  %v674_v45 = vmul.f32 %v2170_v38, %v460_v17  ;;  %v706_v48 = vmul.f32 %v2170_v38, %v588_v20 }
 0x107   :  { %v747_v44 = vadd.f32 %v2175_v40, %v676_v29  ;;  %v2260_v37 = vadd.f32 %v2175_v40, %v708_v30  ;;  %v872_v49 = vmax.f32 %v808_v41, 0.0  ;;  %v806_v52 = vadd.f32 3.0, %v742_v43 }
 0x108   :  { %v904_v51 = vmax.f32 %v840_v42, 0.0  ;;  %v838_v53 = vadd.f32 3.0, %v774_v36  ;;  %v1031_v56 = vmul.f32 %v967_v28, %v2235_v50  ;;  %v2267_v47 = vadd.f32 %v2175_v40, %v674_v45  ;;  %v1897_v45 = vpop.f32.mrf.mxu0 }
 0x109   :  { %v811_v57 = vadd.f32 3.0, %v747_v44  ;;  %v843_v58 = vadd.f32 3.0, %v2260_v37  ;;  %v936_v60 = vmin.f32 %v872_v49, 6.0  ;;  %v870_v62 = vmax.f32 %v806_v52, 0.0 }
 0x10a   :  { %v968_v61 = vmin.f32 %v904_v51, 6.0  ;;  %v902_v63 = vmax.f32 %v838_v53, 0.0  ;;  %v997_v2 = vmul.f32 %v933_v35, %v2241_v46  ;;  %v1029_v3 = vmul.f32 %v965_v39, %v2244_v59 }
 0x10b   :  { %v875_v4 = vmax.f32 %v811_v57, 0.0  ;;  %v2272_v0 = vadd.f32 %v2175_v40, %v706_v48  ;;  %v1000_v5 = vmul.f32 %v936_v60, %v744_v31  ;;  %v934_v1 = vmin.f32 %v870_v62, 6.0 }
 0x10c   :  { %v1032_v50 = vmul.f32 %v968_v61, %v776_v18  ;;  %v966_v6 = vmin.f32 %v902_v63, 6.0  ;;  %v1063_v9 = vmul.f32 0.16666667, %v999_v27  ;;  %v1095_v10 = vmul.f32 0.16666667, %v1031_v56 }
 0x10d   :  { %v907_v11 = vmax.f32 %v843_v58, 0.0  ;;  %v809_v12 = vadd.f32 3.0, %v2267_v47  ;;  %v1064_v13 = vmul.f32 0.16666667, %v1000_v5  ;;  %v998_v46 = vmul.f32 %v934_v1, %v742_v43 }
 0x10e   :  { %v1096_v14 = vmul.f32 0.16666667, %v1032_v50  ;;  %v1030_v15 = vmul.f32 %v966_v6, %v774_v36  ;;  %v1061_v59 = vmul.f32 0.16666667, %v997_v2  ;;  %v1093_v16 = vmul.f32 0.16666667, %v1029_v3  ;;  %v479_v2 = vpop.f32.mrf.mxu0 }
 0x10f   :  { %v939_v17 = vmin.f32 %v875_v4, 6.0  ;;  %v841_v20 = vadd.f32 3.0, %v2272_v0  ;;  %v1683_v21 = vpack.c.bf16 %v1064_v13, %v1063_v9  ;;  %v1062_v23 = vmul.f32 0.16666667, %v998_v46 }
 0x110   :  { %v1763_v22 = vpack.c.bf16 %v1096_v14, %v1095_v10  ;;  %v1094_v24 = vmul.f32 0.16666667, %v1030_v15  ;;  %v971_v27 = vmin.f32 %v907_v11, 6.0  ;;  %v873_v28 = vmax.f32 %v809_v12, 0.0 }
 0x111   :  { %1811 = vst [vmem:[#allocation2 + $0x38] sm:$0xff] %v1683_v21   ;;  %v1678_v31 = vpack.c.bf16 %v1062_v23, %v1061_v59  ;;  %v677_v32 = vmul.f32 %v1893_v19, %v2170_v38  ;;  %v709_v33 = vmul.f32 %v1925_v34, %v2170_v38  ;;  %v1003_v35 = vmul.f32 %v939_v17, %v747_v44  ;;  %v1929_v19 = vpop.f32.mrf.mxu1  ;;  %v1900_v59 = vpop.f32.mrf.mxu0 }
 0x112   :  { %1827 = vst [vmem:[#allocation2 + $0xb8] sm:$0xff] %v1763_v22   ;;  %v1758_v18 = vpack.c.bf16 %v1094_v24, %v1093_v16  ;;  %v905_v39 = vmax.f32 %v841_v20, 0.0  ;;  %v675_v29 = vmul.f32 %v2170_v38, %v463_v54  ;;  %v707_v30 = vmul.f32 %v2170_v38, %v591_v55 }
 0x113   :  { %1810 = vst [vmem:[#allocation2 + $0x30] sm:$0xff] %v1678_v31   ;;  %v748_v41 = vadd.f32 %v2175_v40, %v677_v32  ;;  %v780_v42 = vadd.f32 %v2175_v40, %v709_v33  ;;  %v680_v43 = vmul.f32 %v1896_v7, %v2170_v38  ;;  %v712_v36 = vmul.f32 %v1928_v8, %v2170_v38  ;;  %v607_v3 = vpop.f32.mrf.mxu1  ;;  %v492_v32 = vpop.f32.mrf.mxu0 }
 0x114   :  { %1826 = vst [vmem:[#allocation2 + $0xb0] sm:$0xff] %v1758_v18   ;;  %v746_v34 = vadd.f32 %v2175_v40, %v675_v29  ;;  %v778_v44 = vadd.f32 %v2175_v40, %v707_v30  ;;  %v678_v48 = vmul.f32 %v2170_v38, %v476_v25  ;;  %v710_v49 = vmul.f32 %v2170_v38, %v604_v26 }
 0x115   :  { %v937_v51 = vmin.f32 %v873_v28, 6.0  ;;  %v812_v52 = vadd.f32 3.0, %v748_v41  ;;  %v844_v53 = vadd.f32 3.0, %v780_v42  ;;  %v2289_v54 = vadd.f32 %v2175_v40, %v680_v43  ;;  %v1932_v16 = vpop.f32.mrf.mxu1 }
 0x116   :  { %v1035_v55 = vmul.f32 %v971_v27, %v2260_v37  ;;  %v969_v56 = vmin.f32 %v905_v39, 6.0  ;;  %v810_v57 = vadd.f32 3.0, %v746_v34  ;;  %v842_v58 = vadd.f32 3.0, %v778_v44 }
 0x117   :  { %v876_v60 = vmax.f32 %v812_v52, 0.0  ;;  %v908_v61 = vmax.f32 %v844_v53, 0.0  ;;  %v2293_v62 = vadd.f32 %v2175_v40, %v712_v36  ;;  %v2296_v63 = vadd.f32 %v2175_v40, %v678_v48  ;;  %v620_v33 = vpop.f32.mrf.mxu1  ;;  %v1901_v53 = vpop.f32.mrf.mxu0 }
 0x118   :  { %v874_v4 = vmax.f32 %v810_v57, 0.0  ;;  %v906_v5 = vmax.f32 %v842_v58, 0.0  ;;  %v815_v50 = vadd.f32 3.0, %v2289_v54  ;;  %v2300_v1 = vadd.f32 %v2175_v40, %v710_v49 }
 0x119   :  { %v1067_v37 = vmul.f32 0.16666667, %v1003_v35  ;;  %v1001_v6 = vmul.f32 %v937_v51, %v2267_v47  ;;  %v940_v7 = vmin.f32 %v876_v60, 6.0  ;;  %v972_v8 = vmin.f32 %v908_v61, 6.0 }
 0x11a   :  { %v1099_v9 = vmul.f32 0.16666667, %v1035_v55  ;;  %v1033_v10 = vmul.f32 %v969_v56, %v2272_v0  ;;  %v938_v11 = vmin.f32 %v874_v4, 6.0  ;;  %v970_v12 = vmin.f32 %v906_v5, 6.0  ;;  %v1933_v4 = vpop.f32.mrf.mxu1 }
 0x11b   :  { %v1004_v13 = vmul.f32 %v940_v7, %v748_v41  ;;  %v1036_v14 = vmul.f32 %v972_v8, %v780_v42  ;;  %v847_v46 = vadd.f32 3.0, %v2293_v62  ;;  %v813_v15 = vadd.f32 3.0, %v2296_v63 }
 0x11c   :  { %v1002_v17 = vmul.f32 %v938_v11, %v746_v34  ;;  %v1034_v20 = vmul.f32 %v970_v12, %v778_v44  ;;  %v879_v21 = vmax.f32 %v815_v50, 0.0  ;;  %v845_v47 = vadd.f32 3.0, %v2300_v1  ;;  %v495_v11 = vpop.f32.mrf.mxu0 }
 0x11d   :  { %v1065_v22 = vmul.f32 0.16666667, %v1001_v6  ;;  %v1068_v23 = vmul.f32 0.16666667, %v1004_v13  ;;  %v1100_v24 = vmul.f32 0.16666667, %v1036_v14  ;;  %v681_v41 = vmul.f32 %v1897_v45, %v2170_v38 }
 0x11e   :  { %v1097_v25 = vmul.f32 0.16666667, %v1033_v10  ;;  %v1066_v0 = vmul.f32 0.16666667, %v1002_v17  ;;  %v1098_v26 = vmul.f32 0.16666667, %v1034_v20  ;;  %v713_v42 = vmul.f32 %v1929_v19, %v2170_v38  ;;  %v623_v17 = vpop.f32.mrf.mxu1 }
 0x11f   :  { %v1693_v27 = vpack.c.bf16 %v1068_v23, %v1067_v37  ;;  %v1773_v28 = vpack.c.bf16 %v1100_v24, %v1099_v9  ;;  %v911_v31 = vmax.f32 %v847_v46, 0.0  ;;  %v877_v18 = vmax.f32 %v813_v15, 0.0 }
 0x120   :  { %v1688_v35 = vpack.c.bf16 %v1066_v0, %v1065_v22  ;;  %v1768_v39 = vpack.c.bf16 %v1098_v26, %v1097_v25  ;;  %v943_v29 = vmin.f32 %v879_v21, 6.0  ;;  %v909_v30 = vmax.f32 %v845_v47, 0.0  ;;  %v1904_v25 = vpop.f32.mrf.mxu0 }
 0x121   :  { %1813 = vst [vmem:[#allocation2 + $0x48] sm:$0xff] %v1693_v27   ;;  %1829 = vst [vmem:[#allocation2 + $0xc8] sm:$0xff] %v1773_v28   ;;  %v679_v43 = vmul.f32 %v2170_v38, %v479_v2  ;;  %v711_v36 = vmul.f32 %v2170_v38, %v607_v3  ;;  %v684_v34 = vmul.f32 %v1900_v59, %v2170_v38  ;;  %v975_v55 = vmin.f32 %v911_v31, 6.0 }
 0x122   :  { %1812 = vst [vmem:[#allocation2 + $0x40] sm:$0xff] %v1688_v35   ;;  %1828 = vst [vmem:[#allocation2 + $0xc0] sm:$0xff] %v1768_v39   ;;  %v716_v44 = vmul.f32 %v1932_v16, %v2170_v38  ;;  %v682_v48 = vmul.f32 %v2170_v38, %v492_v32  ;;  %v714_v49 = vmul.f32 %v2170_v38, %v620_v33  ;;  %v941_v56 = vmin.f32 %v877_v18, 6.0  ;;  %v1936_v35 = vpop.f32.mrf.mxu1 }
 0x123   :  { %v752_v51 = vadd.f32 %v2175_v40, %v681_v41  ;;  %v784_v45 = vadd.f32 %v2175_v40, %v713_v42  ;;  %v750_v19 = vadd.f32 %v2175_v40, %v679_v43  ;;  %v782_v52 = vadd.f32 %v2175_v40, %v711_v36 }
 0x124   :  { %v2320_v57 = vadd.f32 %v2175_v40, %v684_v34  ;;  %v2323_v58 = vadd.f32 %v2175_v40, %v716_v44  ;;  %v1007_v5 = vmul.f32 %v943_v29, %v2289_v54  ;;  %v973_v50 = vmin.f32 %v909_v30, 6.0  ;;  %v508_v34 = vpop.f32.mrf.mxu0 }
 0x125   :  { %v816_v60 = vadd.f32 3.0, %v752_v51  ;;  %v848_v61 = vadd.f32 3.0, %v784_v45  ;;  %v814_v2 = vadd.f32 3.0, %v750_v19  ;;  %v846_v3 = vadd.f32 3.0, %v782_v52 }
 0x126   :  { %v2327_v37 = vadd.f32 %v2175_v40, %v682_v48  ;;  %v2330_v6 = vadd.f32 %v2175_v40, %v714_v49  ;;  %v1039_v12 = vmul.f32 %v975_v55, %v2293_v62  ;;  %v1005_v13 = vmul.f32 %v941_v56, %v2296_v63  ;;  %v636_v55 = vpop.f32.mrf.mxu1 }
 0x127   :  { %v880_v7 = vmax.f32 %v816_v60, 0.0  ;;  %v912_v8 = vmax.f32 %v848_v61, 0.0  ;;  %v878_v9 = vmax.f32 %v814_v2, 0.0  ;;  %v910_v10 = vmax.f32 %v846_v3, 0.0 }
 0x128   :  { %v819_v14 = vadd.f32 3.0, %v2320_v57  ;;  %v851_v54 = vadd.f32 3.0, %v2323_v58  ;;  %v1071_v20 = vmul.f32 0.16666667, %v1007_v5  ;;  %v1037_v21 = vmul.f32 %v973_v50, %v2300_v1 }
 0x129   :  { %v944_v46 = vmin.f32 %v880_v7, 6.0  ;;  %v976_v15 = vmin.f32 %v912_v8, 6.0  ;;  %v942_v59 = vmin.f32 %v878_v9, 6.0  ;;  %v974_v16 = vmin.f32 %v910_v10, 6.0 }
 0x12a   :  { %v817_v47 = vadd.f32 3.0, %v2327_v37  ;;  %v849_v22 = vadd.f32 3.0, %v2330_v6  ;;  %v1103_v0 = vmul.f32 0.16666667, %v1039_v12  ;;  %v1069_v26 = vmul.f32 0.16666667, %v1005_v13 }
 0x12b   :  { %v1008_v23 = vmul.f32 %v944_v46, %v752_v51  ;;  %v1040_v62 = vmul.f32 %v976_v15, %v784_v45  ;;  %v1006_v24 = vmul.f32 %v942_v59, %v750_v19  ;;  %v1038_v63 = vmul.f32 %v974_v16, %v782_v52 }
 0x12c   :  { %v883_v27 = vmax.f32 %v819_v14, 0.0  ;;  %v915_v28 = vmax.f32 %v851_v54, 0.0  ;;  %v685_v33 = vmul.f32 %v1901_v53, %v2170_v38  ;;  %v1101_v1 = vmul.f32 0.16666667, %v1037_v21 }
 0x12d   :  { %v1072_v31 = vmul.f32 0.16666667, %v1008_v23  ;;  %v1104_v18 = vmul.f32 0.16666667, %v1040_v62  ;;  %v1070_v32 = vmul.f32 0.16666667, %v1006_v24  ;;  %v717_v30 = vmul.f32 %v1933_v4, %v2170_v38 }
 0x12e   :  { %v1102_v39 = vmul.f32 0.16666667, %v1038_v63  ;;  %v881_v29 = vmax.f32 %v817_v47, 0.0  ;;  %v913_v36 = vmax.f32 %v849_v22, 0.0  ;;  %v947_v48 = vmin.f32 %v883_v27, 6.0  ;;  %v1905_v22 = vpop.f32.mrf.mxu0 }
 0x12f   :  { %v1703_v41 = vpack.c.bf16 %v1072_v31, %v1071_v20  ;;  %v1783_v42 = vpack.c.bf16 %v1104_v18, %v1103_v0  ;;  %v1698_v43 = vpack.c.bf16 %v1070_v32, %v1069_v26  ;;  %v756_v49 = vadd.f32 %v2175_v40, %v685_v33 }
 0x130   :  { %v1778_v44 = vpack.c.bf16 %v1102_v39, %v1101_v1  ;;  %v788_v51 = vadd.f32 %v2175_v40, %v717_v30  ;;  %v979_v45 = vmin.f32 %v915_v28, 6.0  ;;  %v683_v19 = vmul.f32 %v2170_v38, %v495_v11  ;;  %v1980_v30 = vld [vmem:[%s2382_s2] ss:$0 sm:$0xff]  ;;  %s2005_s2 = smov [#allocation2]  }
 0x131   :  { %1815 = vst [vmem:[#allocation2 + $0x58] sm:$0xff] %v1703_v41   ;;  %1831 = vst [vmem:[#allocation2 + $0xd8] sm:$0xff] %v1783_v42   ;;  %v715_v52 = vmul.f32 %v2170_v38, %v623_v17  ;;  %v688_v53 = vmul.f32 %v1904_v25, %v2170_v38  ;;  %v820_v56 = vadd.f32 3.0, %v756_v49  ;;  %v720_v61 = vmul.f32 %v1936_v35, %v2170_v38  ;;  %v1937_v25 = vpop.f32.mrf.mxu1  ;;  %v511_v35 = vpop.f32.mrf.mxu0 }
 0x132   :  { %1814 = vst [vmem:[#allocation2 + $0x50] sm:$0xff] %v1698_v43   ;;  %1830 = vst [vmem:[#allocation2 + $0xd0] sm:$0xff] %v1778_v44   ;;  %v852_v60 = vadd.f32 3.0, %v788_v51  ;;  %v686_v2 = vmul.f32 %v2170_v38, %v508_v34  ;;  %v945_v3 = vmin.f32 %v881_v29, 6.0  ;;  %v977_v4 = vmin.f32 %v913_v36, 6.0 }
 0x133   :  { %v754_v5 = vadd.f32 %v2175_v40, %v683_v19  ;;  %v786_v50 = vadd.f32 %v2175_v40, %v715_v52  ;;  %v1011_v7 = vmul.f32 %v947_v48, %v2320_v57  ;;  %v884_v8 = vmax.f32 %v820_v56, 0.0  ;;  %v639_v42 = vpop.f32.mrf.mxu1 }
 0x134   :  { %v916_v9 = vmax.f32 %v852_v60, 0.0  ;;  %v718_v10 = vmul.f32 %v2170_v38, %v636_v55  ;;  %v1043_v11 = vmul.f32 %v979_v45, %v2323_v58  ;;  %v2354_v14 = vadd.f32 %v2175_v40, %v688_v53 }
 0x135   :  { %v818_v12 = vadd.f32 3.0, %v754_v5  ;;  %v850_v13 = vadd.f32 3.0, %v786_v50  ;;  %v948_v54 = vmin.f32 %v884_v8, 6.0  ;;  %v2357_v15 = vadd.f32 %v2175_v40, %v720_v61 }
 0x136   :  { %v980_v46 = vmin.f32 %v916_v9, 6.0  ;;  %v2360_v59 = vadd.f32 %v2175_v40, %v686_v2  ;;  %v1009_v57 = vmul.f32 %v945_v3, %v2327_v37  ;;  %v1041_v16 = vmul.f32 %v977_v4, %v2330_v6 }
 0x137   :  { %v882_v38 = vmax.f32 %v818_v12, 0.0  ;;  %v914_v17 = vmax.f32 %v850_v13, 0.0  ;;  %v1075_v58 = vmul.f32 0.16666667, %v1011_v7  ;;  %v1012_v20 = vmul.f32 %v948_v54, %v756_v49  ;;  %v1981_v49 = vld [vmem:[%s2383_s3] ss:$0 sm:$0xff] }
 0x138   :  { %v1044_v21 = vmul.f32 %v980_v46, %v788_v51  ;;  %v789_v47 = vadd.f32 %v2175_v40, %v718_v10  ;;  %v1107_v23 = vmul.f32 0.16666667, %v1043_v11  ;;  %v823_v63 = vadd.f32 3.0, %v2354_v14  ;;  %s1438_s3 = sshll.u32 %s2005_s2, 4  ;;  %s1439_s3 = int_to_ptr.vmem [resolvable:$true] %s1438_s3 }
 0x139   :  { %v946_v62 = vmin.f32 %v882_v38, 6.0  ;;  %v978_v24 = vmin.f32 %v914_v17, 6.0  ;;  %v1076_v0 = vmul.f32 0.16666667, %v1012_v20  ;;  %v855_v37 = vadd.f32 3.0, %v2357_v15  ;;  %s1982_s9 = scalar_lea.vmem %s1439_s3, 4096  ;;  %p1987_p1 = scmp.lt.s32.totalorder %s1439_s3, %s1439_s3 }
 0x13a   :  { %v1108_v26 = vmul.f32 0.16666667, %v1044_v21  ;;  %v821_v6 = vadd.f32 3.0, %v2360_v59  ;;  %v1073_v27 = vmul.f32 0.16666667, %v1009_v57  ;;  %v853_v40 = vadd.f32 3.0, %v789_v47  ;;  %p1983_p0 = scmp.ne.s32.totalorder %s1439_s3, %s1982_s9  ;;  %p1988_p2 = scmp.lt.s32.totalorder %s1982_s9, %s1982_s9 }
 0x13b   :  { %v1010_v28 = vmul.f32 %v946_v62, %v754_v5  ;;  %v1042_v31 = vmul.f32 %v978_v24, %v786_v50  ;;  %v1105_v18 = vmul.f32 0.16666667, %v1041_v16  ;;  %v1713_v32 = vpack.c.bf16 %v1076_v0, %v1075_v58 }
 0x13c   :  { %v1793_v33 = vpack.c.bf16 %v1108_v26, %v1107_v23  ;;  %v887_v29 = vmax.f32 %v823_v63, 0.0  ;;  %v689_v41 = vmul.f32 %v1980_v30, %v1905_v22  ;;  %v919_v43 = vmax.f32 %v855_v37, 0.0  ;;  %p1989_p3 = por %p1988_p2, %p1987_p1 }
 0x13d   :  { %v1074_v1 = vmul.f32 0.16666667, %v1010_v28  ;;  %v1106_v39 = vmul.f32 0.16666667, %v1042_v31  ;;  %1817 = vst [vmem:[#allocation2 + $0x68] sm:$0xff] %v1713_v32   ;;  %v885_v36 = vmax.f32 %v821_v6, 0.0  ;;  %v721_v34 = vmul.f32 %v1980_v30, %v1937_v25 }
 0x13e   :  { %1833 = vst [vmem:[#allocation2 + $0xe8] sm:$0xff] %v1793_v33   ;;  %v760_v51 = vadd.f32 %v1981_v49, %v689_v41  ;;  %v687_v45 = vmul.f32 %v1980_v30, %v511_v35  ;;  %v917_v19 = vmax.f32 %v853_v40, 0.0  ;;  %v719_v53 = vmul.f32 %v1980_v30, %v639_v42  ;;  %p1990_p4 = pnand %p1989_p3, %p1983_p0 }
 0x13f   :  { %v1708_v44 = vpack.c.bf16 %v1074_v1, %v1073_v27  ;;  %v1788_v48 = vpack.c.bf16 %v1106_v39, %v1105_v18  ;;  %v792_v52 = vadd.f32 %v1981_v49, %v721_v34  ;;  %v951_v55 = vmin.f32 %v887_v29, 6.0 }
 0x140   :  { %v824_v56 = vadd.f32 3.0, %v760_v51  ;;  %v758_v60 = vadd.f32 %v1981_v49, %v687_v45  ;;  %v983_v61 = vmin.f32 %v919_v43, 6.0  ;;  %v790_v3 = vadd.f32 %v1981_v49, %v719_v53 }
 0x141   :  { %1816 = vst [vmem:[#allocation2 + $0x60] sm:$0xff] %v1708_v44   ;;  %1832 = vst [vmem:[#allocation2 + $0xe0] sm:$0xff] %v1788_v48   ;;  %v856_v2 = vadd.f32 3.0, %v792_v52  ;;  %v949_v4 = vmin.f32 %v885_v36, 6.0  ;;  %v981_v7 = vmin.f32 %v917_v19, 6.0  ;;  %v1015_v10 = vmul.f32 %v951_v55, %v2354_v14 }
 0x142   :  { %v888_v5 = vmax.f32 %v824_v56, 0.0  ;;  %v822_v50 = vadd.f32 3.0, %v758_v60  ;;  %v854_v9 = vadd.f32 3.0, %v790_v3  ;;  %v1047_v13 = vmul.f32 %v983_v61, %v2357_v15 }
 0x143   :  { %v920_v8 = vmax.f32 %v856_v2, 0.0  ;;  %v1013_v57 = vmul.f32 %v949_v4, %v2360_v59  ;;  %v1045_v17 = vmul.f32 %v981_v7, %v789_v47  ;;  %v1079_v21 = vmul.f32 0.16666667, %v1015_v10 }
 0x144   :  { %v952_v11 = vmin.f32 %v888_v5, 6.0  ;;  %v886_v12 = vmax.f32 %v822_v50, 0.0  ;;  %v918_v46 = vmax.f32 %v854_v9, 0.0  ;;  %v1111_v62 = vmul.f32 0.16666667, %v1047_v13 }
 0x145   :  { %v984_v54 = vmin.f32 %v920_v8, 6.0  ;;  %v1077_v14 = vmul.f32 0.16666667, %v1013_v57  ;;  %v1109_v0 = vmul.f32 0.16666667, %v1045_v17 }
 0x146   :  { %v1016_v16 = vmul.f32 %v952_v11, %v760_v51  ;;  %v950_v38 = vmin.f32 %v886_v12, 6.0  ;;  %v982_v20 = vmin.f32 %v918_v46, 6.0 }
 0x147   :  { %v1048_v58 = vmul.f32 %v984_v54, %v792_v52 }
 0x148   :  { %v1080_v22 = vmul.f32 0.16666667, %v1016_v16  ;;  %v1014_v23 = vmul.f32 %v950_v38, %v758_v60  ;;  %v1046_v63 = vmul.f32 %v982_v20, %v790_v3 }
 0x149   :  { %v1112_v24 = vmul.f32 0.16666667, %v1048_v58 }
 0x14a   :  { %v1723_v25 = vpack.c.bf16 %v1080_v22, %v1079_v21  ;;  %v1078_v15 = vmul.f32 0.16666667, %v1014_v23  ;;  %v1110_v37 = vmul.f32 0.16666667, %v1046_v63 }
 0x14b   :  { %v1803_v26 = vpack.c.bf16 %v1112_v24, %v1111_v62 }
 0x14c   :  { %1819 = vst [vmem:[#allocation2 + $0x78] sm:$0xff] %v1723_v25   ;;  %v1718_v59 = vpack.c.bf16 %v1078_v15, %v1077_v14  ;;  %v1798_v47 = vpack.c.bf16 %v1110_v37, %v1109_v0 }
 0x14d   :  { %1835 = vst [vmem:[#allocation2 + $0xf8] sm:$0xff] %v1803_v26  }
 0x14e   :  { %1818 = vst [vmem:[#allocation2 + $0x70] sm:$0xff] %v1718_v59   ;;  %1834 = vst [vmem:[#allocation2 + $0xf0] sm:$0xff] %v1798_v47  }
 0x14f   :  { %1993 = shalt.err (!%p1990_p4)
}
 0x150   :  { %s2006_s10 = smov 64   ;;  %s2007_s11 = smov 4  }
 0x151   :  { %1444 = dma.vmem_to_hbm [thread:$0]  %s1439_s3, 4096, %s2384_s4, [#allocation3], %s2006_s10, %s2006_s10, %s2007_s11  }
 0x152   :  { %2002 = dma.done.wait [#allocation3], 4096  }
 0x153   :  { %2003 = vsyncadd [#allocation3], 4294963200 }
 0x154   :  { %1448 = vsyncpa [#allocation3], 1 }

</bundles_post_ra>
